<compile_context>
chip_gen: v6e
topology: v6e:2x2x1
jax: 0.10.0
libtpu: 0.0.40
codegen_flags: <defaults>
</compile_context>

<pallas_src>
import functools

import numpy as np
import jax
import jax.numpy as jnp
from jax.experimental import pallas as pl
from jax.experimental.pallas import tpu as pltpu

NEG_SLOPE = 0.01  # F.leaky_relu default negative_slope


def _leaky_relu(x):
    return jnp.where(x >= 0, x, NEG_SLOPE * x)


def _round_up(x, m):
    return ((x + m - 1) // m) * m


def _vmem_capacity_bytes():
    try:
        return int(pltpu.get_tpu_info().vmem_capacity_bytes)
    except Exception:
        return 64 * 1024 * 1024  # conservative: v7x physical VMEM


def _vmem_limit_bytes():
    # generation-aware scoped-VMEM limit (~56 MiB v7x, ~108 MiB v5e/v6e)
    return int(0.85 * _vmem_capacity_bytes())


# ----------------------------- Pallas kernels ------------------------------ #

def mlp_kernel(feat_ref, w1_ref, b1_ref, w2_ref, b2_ref, out_ref):
    # feat: (TM, df_pad) bf16, w1: (df_pad, 1024) bf16, w2: (1024, d_pad) bf16
    # biases f32; accumulate f32 on the MXU, epilogue f32 on the VPU.
    h = jnp.dot(feat_ref[...], w1_ref[...], preferred_element_type=jnp.float32)
    h = _leaky_relu(h + b1_ref[...])
    o = jnp.dot(h.astype(jnp.bfloat16), w2_ref[...],
                preferred_element_type=jnp.float32)
    out_ref[...] = _leaky_relu(o + b2_ref[...])


def project_kernel(x_ref, w_ref, out_ref, *, normalize):
    # x: (TP, d_pad) f32, w: (d_pad, d_pad) bf16 -> out: (TP, d_pad) bf16
    x = x_ref[...]
    if normalize:
        # F.normalize: x / max(||x||_2, 1e-12) == x * rsqrt(max(sumsq, 1e-24))
        sumsq = jnp.sum(x * x, axis=1, keepdims=True)
        x = x * jax.lax.rsqrt(jnp.maximum(sumsq, 1e-24))
    out_ref[...] = jnp.dot(x.astype(jnp.bfloat16), w_ref[...],
                           preferred_element_type=jnp.float32
                           ).astype(out_ref.dtype)


def _agg_accumulate(tid_ref, col_ref, cnt_ref, adj_ref, xw_ref, acc_ref,
                    *, blk, max_tiles, xw_resident):
    """acc += sum over non-empty adjacency tiles of this destination block."""
    i = pl.program_id(0)
    j = pl.program_id(1)

    @pl.when(j == 0)
    def _():
        acc_ref[...] = jnp.zeros_like(acc_ref)

    @pl.when(j < cnt_ref[i])          # padded tile slots are skipped
    def _():
        a = adj_ref[0]                # (blk, blk) bf16 tile
        if xw_resident:
            start = pl.multiple_of(col_ref[i * max_tiles + j] * blk, blk)
            xw = xw_ref[pl.ds(start, blk), :]
        else:
            xw = xw_ref[...]          # (blk, d_pad), streamed via index_map
        acc_ref[...] += jnp.dot(a, xw, preferred_element_type=jnp.float32)


def agg_kernel(tid_ref, col_ref, cnt_ref, adj_ref, xw_ref, out_ref,
               *, blk, max_tiles, xw_resident):
    # h = leaky_relu(A @ XW); accumulate directly in the resident f32 output.
    _agg_accumulate(tid_ref, col_ref, cnt_ref, adj_ref, xw_ref, out_ref,
                    blk=blk, max_tiles=max_tiles, xw_resident=xw_resident)

    @pl.when(pl.program_id(1) == pl.num_programs(1) - 1)
    def _():
        out_ref[...] = _leaky_relu(out_ref[...])


def agg_project_kernel(tid_ref, col_ref, cnt_ref, adj_ref, xw_ref, w_next_ref,
                       out_ref, acc_ref, *, blk, max_tiles, xw_resident):
    # Fused: out = (leaky_relu(A @ XW) @ W_next) emitted as bf16 (next layer's
    # pre-projected features).  f32 accumulation lives in VMEM scratch.
    _agg_accumulate(tid_ref, col_ref, cnt_ref, adj_ref, xw_ref, acc_ref,
                    blk=blk, max_tiles=max_tiles, xw_resident=xw_resident)

    @pl.when(pl.program_id(1) == pl.num_programs(1) - 1)
    def _():
        h = _leaky_relu(acc_ref[...]).astype(jnp.bfloat16)
        out_ref[...] = jnp.dot(h, w_next_ref[...],
                               preferred_element_type=jnp.float32
                               ).astype(out_ref.dtype)


# ------------------------------ wrappers ----------------------------------- #

def run_mlp(feats, w1_t, b1, w2_t, b2, *, tm):
    m_pad, df_pad = feats.shape
    hidden = w1_t.shape[1]
    d_pad = w2_t.shape[1]
    return pl.pallas_call(
        mlp_kernel,
        out_shape=jax.ShapeDtypeStruct((m_pad, d_pad), jnp.float32),
        grid_spec=pltpu.PrefetchScalarGridSpec(
            num_scalar_prefetch=0,
            grid=(m_pad // tm,),
            in_specs=[
                pl.BlockSpec((tm, df_pad), lambda i: (i, 0)),
                # grid-invariant weights/biases: single-buffered (VMEM headroom)
                pl.BlockSpec((df_pad, hidden), lambda i: (0, 0),
                             pipeline_mode=pl.Buffered(1)),
                pl.BlockSpec((1, hidden), lambda i: (0, 0),
                             pipeline_mode=pl.Buffered(1)),
                pl.BlockSpec((hidden, d_pad), lambda i: (0, 0),
                             pipeline_mode=pl.Buffered(1)),
                pl.BlockSpec((1, d_pad), lambda i: (0, 0),
                             pipeline_mode=pl.Buffered(1)),
            ],
            out_specs=pl.BlockSpec((tm, d_pad), lambda i: (i, 0)),
        ),
        compiler_params=pltpu.CompilerParams(
            dimension_semantics=("parallel",),
            vmem_limit_bytes=_vmem_limit_bytes()),
    )(feats, w1_t, b1, w2_t, b2)


def run_project(x, w, *, tp, normalize):
    n_pad, d_pad = x.shape
    kernel = functools.partial(project_kernel, normalize=normalize)
    return pl.pallas_call(
        kernel,
        out_shape=jax.ShapeDtypeStruct((n_pad, d_pad), jnp.bfloat16),
        grid_spec=pltpu.PrefetchScalarGridSpec(
            num_scalar_prefetch=0,
            grid=(n_pad // tp,),
            in_specs=[
                pl.BlockSpec((tp, d_pad), lambda i: (i, 0)),
                pl.BlockSpec((d_pad, d_pad), lambda i: (0, 0),
                             pipeline_mode=pl.Buffered(1)),
            ],
            out_specs=pl.BlockSpec((tp, d_pad), lambda i: (i, 0)),
        ),
        compiler_params=pltpu.CompilerParams(
            dimension_semantics=("parallel",),
            vmem_limit_bytes=_vmem_limit_bytes()),
    )(x, w)


def run_aggregate(tile_id, tile_col, tile_cnt, adj_tiles, xw, *, blk, max_tiles,
                  w_next=None):
    """Block-sparse scatter-add aggregation: out = leaky_relu(A @ xw)
    (optionally fused with the next projection: out = leaky_relu(A @ xw) @ w_next).
    """
    n_pad, d_pad = xw.shape
    nb = n_pad // blk

    # --- xw residency decision: keep the whole projected feature matrix in
    # VMEM (single buffer) when it fits alongside tiles/output/accumulator. --- #
    xw_bytes = n_pad * d_pad * xw.dtype.itemsize
    fixed = 2 * blk * blk * adj_tiles.dtype.itemsize      # double-buffered adj tile
    fixed += 2 * blk * d_pad * 4                          # double-buffered output
    fixed += blk * d_pad * 4                              # f32 accumulator
    fixed += d_pad * d_pad * 2                            # fused weight
    xw_resident = (xw_bytes + fixed + (4 << 20)) <= int(0.8 * _vmem_capacity_bytes())

    if xw_resident:
        xw_spec = pl.BlockSpec((n_pad, d_pad), lambda i, j, t, c, n: (0, 0),
                               pipeline_mode=pl.Buffered(1))
    else:
        xw_spec = pl.BlockSpec((blk, d_pad),
                               lambda i, j, t, c, n: (c[i * max_tiles + j], 0))

    adj_spec = pl.BlockSpec((1, blk, blk),
                            lambda i, j, t, c, n: (t[i * max_tiles + j], 0, 0))
    out_spec = pl.BlockSpec((blk, d_pad), lambda i, j, t, c, n: (i, 0))

    if w_next is None:
        kernel = functools.partial(agg_kernel, blk=blk, max_tiles=max_tiles,
                                   xw_resident=xw_resident)
        in_specs = [adj_spec, xw_spec]
        scratch = []
        operands = (tile_id, tile_col, tile_cnt, adj_tiles, xw)
        out_dt = jnp.float32
    else:
        kernel = functools.partial(agg_project_kernel, blk=blk,
                                   max_tiles=max_tiles, xw_resident=xw_resident)
        in_specs = [adj_spec, xw_spec,
                    pl.BlockSpec((d_pad, d_pad), lambda i, j, t, c, n: (0, 0),
                                 pipeline_mode=pl.Buffered(1))]
        scratch = [pltpu.VMEM((blk, d_pad), jnp.float32)]
        operands = (tile_id, tile_col, tile_cnt, adj_tiles, xw, w_next)
        out_dt = jnp.bfloat16

    return pl.pallas_call(
        kernel,
        out_shape=jax.ShapeDtypeStruct((n_pad, d_pad), out_dt),
        grid_spec=pltpu.PrefetchScalarGridSpec(
            num_scalar_prefetch=3,
            grid=(nb, max_tiles),
            in_specs=in_specs,
            out_specs=out_spec,
            scratch_shapes=scratch,
        ),
        compiler_params=pltpu.CompilerParams(
            dimension_semantics=("parallel", "arbitrary"),
            vmem_limit_bytes=_vmem_limit_bytes()),
    )(*operands)


def xavier_normal(key, shape):
    fan_out, fan_in = shape[0], shape[1]
    std = float(np.sqrt(2.0 / (fan_in + fan_out)))
    return std * jax.random.normal(key, shape, dtype=jnp.float32)


class MMGraphSAGEPallas:
    """JAX/Pallas re-implementation of MMGraphSAGE.forward (inference)."""

    def __init__(self, features, edge_index, num_user, num_item,
                 dim_latent, dim_feat, key):
        self.num_user = num_user
        self.num_item = num_item
        self.dim_latent = dim_latent
        self.dim_feat = dim_feat
        hidden = 1024

        # --- padded / tiled geometry ------------------------------------- #
        self.d_pad = _round_up(dim_latent, 128)   # lane-dense latent dim
        self.df_pad = _round_up(dim_feat, 128)    # lane-dense / full-K MLP input
        self.tm_mlp = 256 if num_item >= 512 else _round_up(max(num_item, 8), 8)
        self.m_pad = _round_up(num_item, self.tm_mlp)

        n = num_user + num_item
        if n <= 256:
            self.blk = 128
        elif n <= 4096:
            self.blk = 256
        else:
            self.blk = 512          # >= 2 row blocks -> both v7x TCs get work
        self.n_pad = _round_up(n, self.blk)
        self.nb = self.n_pad // self.blk

        # --- item content features (rows + feat cols zero-padded, bf16) --- #
        self._feat_f32 = jnp.asarray(features, jnp.float32)
        feats = jnp.pad(self._feat_f32,
                        ((0, self.m_pad - num_item), (0, self.df_pad - dim_feat)))
        self.features = feats.astype(jnp.bfloat16)

        # --- block-sparse scatter-add adjacency ---------------------------- #
        # edge_index is (E, 2); PyTorch does .t() -> (2, E) with rows [src; dst]
        # and aggregates out[dst] += msg(x[src]).
        ei = np.asarray(edge_index, np.int64).T
        ei = np.concatenate([ei, ei[[1, 0]]], axis=1)         # bidirectional
        self._edge_index_sym = ei
        src, dst = ei[0], ei[1]
        B, nb = self.blk, self.nb
        keys_flat = (dst // B) * nb + (src // B)
        uniq, inv = np.unique(keys_flat, return_inverse=True)
        num_tiles = max(int(uniq.size), 1)
        tiles = np.zeros((num_tiles, B, B), np.float32)
        if uniq.size:
            np.add.at(tiles, (inv, dst % B, src % B), 1.0)    # A[dst, src] += 1
        tile_bi = (uniq // nb).astype(np.int64)
        tile_bj = (uniq % nb).astype(np.int64)
        cnt = np.bincount(tile_bi, minlength=nb).astype(np.int32)
        max_t = max(int(cnt.max()) if cnt.size else 0, 1)
        col_tbl = np.zeros((nb, max_t), np.int32)
        tid_tbl = np.zeros((nb, max_t), np.int32)
        ptr = np.concatenate([[0], np.cumsum(cnt)]).astype(np.int64)
        for i in range(nb):
            c = int(cnt[i])
            if c:
                col_tbl[i, :c] = tile_bj[ptr[i]:ptr[i + 1]]
                tid_tbl[i, :c] = np.arange(ptr[i], ptr[i + 1], dtype=np.int32)
                # padded slots repeat the last tile -> no extra DMA, skipped by pl.when
                col_tbl[i, c:] = col_tbl[i, c - 1]
                tid_tbl[i, c:] = tid_tbl[i, c - 1]
        # bf16 tiles are exact for integer edge multiplicities <= 256
        self.adj_tiles = jnp.asarray(tiles, jnp.bfloat16)
        self.tile_id = jnp.asarray(tid_tbl.reshape(-1), jnp.int32)   # flat 1D SMEM
        self.tile_col = jnp.asarray(col_tbl.reshape(-1), jnp.int32)
        self.tile_cnt = jnp.asarray(cnt, jnp.int32)
        self.max_tiles = max_t

        # --- parameters ----------------------------------------------------- #
        ks = jax.random.split(key, 8)
        pref = xavier_normal(ks[0], (num_user, dim_latent))
        self._pref_f32 = pref
        self.preference = jnp.pad(pref, ((0, 0), (0, self.d_pad - dim_latent)))

        # linear_layer1: weight (1024, dim_feat) -> transposed, row-padded, bf16
        w1 = xavier_normal(ks[1], (hidden, dim_feat))
        self._w1_f32 = w1
        self.w1_t = jnp.pad(w1.T, ((0, self.df_pad - dim_feat), (0, 0))
                            ).astype(jnp.bfloat16)
        bound1 = 1.0 / np.sqrt(dim_feat)
        b1 = jax.random.uniform(ks[2], (1, hidden), jnp.float32, -bound1, bound1)
        self._b1_f32 = b1
        self.b1 = b1

        # linear_layer2: weight (dim_latent, 1024) -> transposed, col-padded, bf16
        w2 = xavier_normal(ks[3], (dim_latent, hidden))
        self._w2_f32 = w2
        self.w2_t = jnp.pad(w2.T, ((0, 0), (0, self.d_pad - dim_latent))
                            ).astype(jnp.bfloat16)
        bound2 = 1.0 / np.sqrt(hidden)
        b2 = jax.random.uniform(ks[4], (1, dim_latent), jnp.float32, -bound2, bound2)
        self._b2_f32 = b2
        self.b2 = jnp.pad(b2, ((0, 0), (0, self.d_pad - dim_latent)))

        # BaseModel graph-conv weights (dim_latent, dim_latent), zero-padded
        wc1 = xavier_normal(ks[5], (dim_latent, dim_latent))
        wc2 = xavier_normal(ks[6], (dim_latent, dim_latent))
        self._wc1_f32, self._wc2_f32 = wc1, wc2
        pad = ((0, self.d_pad - dim_latent), (0, self.d_pad - dim_latent))
        self.wc1 = jnp.pad(wc1, pad).astype(jnp.bfloat16)
        self.wc2 = jnp.pad(wc2, pad).astype(jnp.bfloat16)

        self.result_embed = None

    # ------------------------------ forward ------------------------------ #
    def forward(self, user_nodes, item_nodes):
        n = self.num_user + self.num_item

        # temp_features = leaky_relu(linear2(leaky_relu(linear1(features))))
        temp = run_mlp(self.features, self.w1_t, self.b1, self.w2_t, self.b2,
                       tm=self.tm_mlp)[:self.num_item]

        # x = normalize(cat(preference, temp))
        x = jnp.concatenate([self.preference, temp], axis=0)      # (n, d_pad) f32
        x = jnp.pad(x, ((0, self.n_pad - n), (0, 0)))

        # xw1 = normalize(x) @ Wc1  (row-L2 normalize fused, bf16 output)
        xw1 = run_project(x, self.wc1, tp=self.blk, normalize=True)

        # layer 1 aggregate fused with layer-2 projection:
        #   xw2 = leaky_relu(A @ xw1) @ Wc2   (bf16, no h1 HBM round trip)
        xw2 = run_aggregate(self.tile_id, self.tile_col, self.tile_cnt,
                            self.adj_tiles, xw1, blk=self.blk,
                            max_tiles=self.max_tiles, w_next=self.wc2)

        # layer 2 aggregate: h2 = leaky_relu(A @ xw2), f32, accumulated in-place
        h2 = run_aggregate(self.tile_id, self.tile_col, self.tile_cnt,
                           self.adj_tiles, xw2, blk=self.blk,
                           max_tiles=self.max_tiles, w_next=None)

        emb = h2[:n, :self.dim_latent]
        self.result_embed = emb

        # scores = sum(x[user] * x[item], dim=1)  (plain JAX gather + reduce)
        u = jnp.take(emb, user_nodes, axis=0)
        i = jnp.take(emb, item_nodes, axis=0)
        return jnp.sum(u * i, axis=1)

    # ---------------- pure-JAX f32 reference (for tolerance check) -------- #
    def reference_forward(self, user_nodes, item_nodes):
        n = self.num_user + self.num_item
        h = _leaky_relu(self._feat_f32 @ self._w1_f32.T + self._b1_f32)
        temp = _leaky_relu(h @ self._w2_f32.T + self._b2_f32)
        x = jnp.concatenate([self._pref_f32, temp], axis=0)
        norm = jnp.sqrt(jnp.sum(x * x, axis=1, keepdims=True))
        x = x / jnp.maximum(norm, 1e-12)
        src, dst = self._edge_index_sym
        a = jnp.zeros((n, n), jnp.float32).at[dst, src].add(1.0)
        h1 = _leaky_relu(a @ (x @ self._wc1_f32))
        h2 = _leaky_relu(a @ (h1 @ self._wc2_f32))
        u = jnp.take(h2, user_nodes, axis=0)
        it = jnp.take(h2, item_nodes, axis=0)
        return jnp.sum(u * it, axis=1)


# ------------------------------- main --------------------------------------- #

if __name__ == "__main__":
    key = jax.random.PRNGKey(0)
    num_user, num_item = 8, 16
    dim_feat, dim_latent = 64, 32
    batch = 4

    k_feat, k_model = jax.random.split(key)
    features = jax.random.normal(k_feat, (num_item, dim_feat), jnp.float32)

    # synthetic bipartite edges: (user, global item index), shape (E, 2)
    rng = np.random.RandomState(0)
    edges = []
    for it in range(num_item):
        for u in rng.choice(num_user, size=2, replace=False):
            edges.append((int(u), num_user + it))
    edge_index = np.asarray(edges, np.int64)

    model = MMGraphSAGEPallas(features, edge_index, num_user, num_item,
                              dim_latent, dim_feat, k_model)

    user_nodes = jnp.array([0, 1, 2, 3], jnp.int32)
    item_nodes = jnp.array([num_user + 0, num_user + 3,
                            num_user + 7, num_user + 11], jnp.int32)

    scores = model.forward(user_nodes, item_nodes)
    jax.block_until_ready(scores)
    assert scores.shape == (batch,) and scores.dtype == jnp.float32
    assert bool(jnp.all(jnp.isfinite(scores)))

    # tolerance check vs f32 reference (bf16-fed MXU -> percent-level drift)
    ref = model.reference_forward(user_nodes, item_nodes)
    err = float(jnp.max(jnp.abs(scores - ref)))
    tol = 0.08 * float(jnp.max(jnp.abs(ref))) + 1e-2
    assert err <= tol, f"|scores - ref| = {err} > tol = {tol}"

    print("KERNEL_OK")
</pallas_src>

<mosaic_0001>
module attributes {stable_mosaic.version = 11 : i64} {
  func.func @mlp_kernel(%arg0: i32, %arg1: memref<16x128xbf16, #tpu.memory_space<vmem>>, %arg2: memref<128x1024xbf16, #tpu.memory_space<vmem>>, %arg3: memref<1x1024xf32, #tpu.memory_space<vmem>>, %arg4: memref<1024x128xbf16, #tpu.memory_space<vmem>>, %arg5: memref<1x128xf32, #tpu.memory_space<vmem>>, %arg6: memref<16x128xf32, #tpu.memory_space<vmem>>) attributes {dimension_semantics = [#tpu.dimension_semantics<parallel>], iteration_bounds = array<i64: 1>, scalar_prefetch = 0 : i64, scratch_operands = 0 : i64, tpu.core_type = #tpu.core_type<tc>, window_params = [{transform_indices = @transform_0, window_bounds = array<i64: 16, 128>}, {pipeline_mode = #tpu.pipeline_mode<synchronous>, transform_indices = @transform_1, window_bounds = array<i64: 128, 1024>}, {pipeline_mode = #tpu.pipeline_mode<synchronous>, transform_indices = @transform_2, window_bounds = array<i64: 1, 1024>}, {pipeline_mode = #tpu.pipeline_mode<synchronous>, transform_indices = @transform_3, window_bounds = array<i64: 1024, 128>}, {pipeline_mode = #tpu.pipeline_mode<synchronous>, transform_indices = @transform_4, window_bounds = array<i64: 1, 128>}, {transform_indices = @transform_5, window_bounds = array<i64: 16, 128>}]} {
    %c0 = arith.constant 0 : index
    %c0_0 = arith.constant 0 : index
    %0 = vector.load %arg1[%c0, %c0_0] : memref<16x128xbf16, #tpu.memory_space<vmem>>, vector<16x128xbf16>
    %c0_1 = arith.constant 0 : index
    %c0_2 = arith.constant 0 : index
    %1 = vector.load %arg2[%c0_1, %c0_2] : memref<128x1024xbf16, #tpu.memory_space<vmem>>, vector<128x1024xbf16>
    %cst = arith.constant dense<0.000000e+00> : vector<16x1024xf32>
    %2 = tpu.matmul %0, %1, %cst {dimension_numbers = #tpu.dot_dimension_numbers<[1], [0], [0], [1], [0, 0, 1, 1], [], []>} : vector<16x128xbf16>, vector<128x1024xbf16>, vector<16x1024xf32> -> vector<16x1024xf32>
    %c0_3 = arith.constant 0 : index
    %c0_4 = arith.constant 0 : index
    %3 = vector.load %arg3[%c0_3, %c0_4] : memref<1x1024xf32, #tpu.memory_space<vmem>>, vector<1x1024xf32>
    %4 = vector.broadcast %3 : vector<1x1024xf32> to vector<16x1024xf32>
    %5 = arith.addf %2, %4 : vector<16x1024xf32>
    %cst_5 = arith.constant 0.000000e+00 : f32
    %6 = vector.broadcast %cst_5 : f32 to vector<16x1024xf32>
    %7 = arith.cmpf oge, %5, %6 : vector<16x1024xf32>
    %cst_6 = arith.constant 0.00999999977 : f32
    %8 = vector.broadcast %cst_6 : f32 to vector<16x1024xf32>
    %9 = arith.mulf %8, %5 : vector<16x1024xf32>
    %10 = arith.select %7, %5, %9 : vector<16x1024xi1>, vector<16x1024xf32>
    %11 = arith.truncf %10 : vector<16x1024xf32> to vector<16x1024xbf16>
    %c0_7 = arith.constant 0 : index
    %c0_8 = arith.constant 0 : index
    %12 = vector.load %arg4[%c0_7, %c0_8] : memref<1024x128xbf16, #tpu.memory_space<vmem>>, vector<1024x128xbf16>
    %cst_9 = arith.constant dense<0.000000e+00> : vector<16x128xf32>
    %13 = tpu.matmul %11, %12, %cst_9 {dimension_numbers = #tpu.dot_dimension_numbers<[1], [0], [0], [1], [0, 0, 1, 1], [], []>} : vector<16x1024xbf16>, vector<1024x128xbf16>, vector<16x128xf32> -> vector<16x128xf32>
    %c0_10 = arith.constant 0 : index
    %c0_11 = arith.constant 0 : index
    %14 = vector.load %arg5[%c0_10, %c0_11] : memref<1x128xf32, #tpu.memory_space<vmem>>, vector<1x128xf32>
    %15 = vector.broadcast %14 : vector<1x128xf32> to vector<16x128xf32>
    %16 = arith.addf %13, %15 : vector<16x128xf32>
    %cst_12 = arith.constant 0.000000e+00 : f32
    %17 = vector.broadcast %cst_12 : f32 to vector<16x128xf32>
    %18 = arith.cmpf oge, %16, %17 : vector<16x128xf32>
    %cst_13 = arith.constant 0.00999999977 : f32
    %19 = vector.broadcast %cst_13 : f32 to vector<16x128xf32>
    %20 = arith.mulf %19, %16 : vector<16x128xf32>
    %21 = arith.select %18, %16, %20 : vector<16x128xi1>, vector<16x128xf32>
    %c0_14 = arith.constant 0 : index
    %c0_15 = arith.constant 0 : index
    %22 = vector.load %arg6[%c0_14, %c0_15] : memref<16x128xf32, #tpu.memory_space<vmem>>, vector<16x128xf32>
    tpu.vector_store %arg6[%c0_14, %c0_15], %21 {strides = array<i32>} : memref<16x128xf32, #tpu.memory_space<vmem>>, vector<16x128xf32>,
    return
  }
  func.func @transform_0(%arg0: i32) -> (i32, i32) {
    %c0_i32 = arith.constant 0 : i32
    %c0_i32_0 = arith.constant 0 : i32
    return %arg0, %c0_i32 : i32, i32
  }
  func.func @transform_1(%arg0: i32) -> (i32, i32) {
    %c0_i32 = arith.constant 0 : i32
    %c0_i32_0 = arith.constant 0 : i32
    %c0_i32_1 = arith.constant 0 : i32
    return %c0_i32, %c0_i32_0 : i32, i32
  }
  func.func @transform_2(%arg0: i32) -> (i32, i32) {
    %c0_i32 = arith.constant 0 : i32
    %c0_i32_0 = arith.constant 0 : i32
    %c0_i32_1 = arith.constant 0 : i32
    return %c0_i32, %c0_i32_0 : i32, i32
  }
  func.func @transform_3(%arg0: i32) -> (i32, i32) {
    %c0_i32 = arith.constant 0 : i32
    %c0_i32_0 = arith.constant 0 : i32
    %c0_i32_1 = arith.constant 0 : i32
    return %c0_i32, %c0_i32_0 : i32, i32
  }
  func.func @transform_4(%arg0: i32) -> (i32, i32) {
    %c0_i32 = arith.constant 0 : i32
    %c0_i32_0 = arith.constant 0 : i32
    %c0_i32_1 = arith.constant 0 : i32
    return %c0_i32, %c0_i32_0 : i32, i32
  }
  func.func @transform_5(%arg0: i32) -> (i32, i32) {
    %c0_i32 = arith.constant 0 : i32
    %c0_i32_0 = arith.constant 0 : i32
    return %arg0, %c0_i32 : i32, i32
  }
}

</mosaic_0001>

<bundles_post_ra>
// kernel: tpu_custom_call.1
= control target key start
LH: loop header
LB: loop body
LE: loop exit
PB: predicated region body
PF: predicated region fallthrough
CT: control target
= control target key end

     0   :  { %10 = vsyncpa [#allocation3], 0  ;;  %s1947_s0 = inlined_call_operand.hbm [shape: bf16[16,128], index: 0, kind: input, shape index: {}]   ;;  %s1948_s1 = inlined_call_operand.hbm [shape: bf16[128,1024], index: 1, kind: input, shape index: {}]   ;;  %s1949_s2 = inlined_call_operand.hbm [shape: f32[1,1024], index: 2, kind: input, shape index: {}]   ;;  %s1950_s3 = inlined_call_operand.hbm [shape: bf16[1024,128], index: 3, kind: input, shape index: {}]   ;;  %s1951_s4 = inlined_call_operand.vmem [shape: f32[1,128], index: 4, kind: input, shape index: {}]   ;;  %s1952_s5 = inlined_call_operand.hbm [shape: f32[16,128], index: 5, kind: output, shape index: {}]  }
   0x1   :  { %11 = vsyncpa [#allocation6], 0 }
   0x2   :  { %12 = vsyncpa [#allocation9], 0 }
   0x3   :  { %13 = vsyncpa [#allocation4], 0  ;;  %s1850_s18 = smov [#allocation5]  }
   0x4   :  { %s31_s19 = sshll.u32 %s1850_s18, 4  ;;  %s32_s19 = int_to_ptr.vmem [resolvable:$true] %s31_s19 }
   0x5   :  { %s1750_s20 = scalar_lea.vmem %s32_s19, 8192  ;;  %p1755_p1 = scmp.lt.s32.totalorder %s32_s19, %s32_s19 }
   0x6   :  { %p1751_p0 = scmp.ne.s32.totalorder %s32_s19, %s1750_s20  ;;  %p1756_p2 = scmp.lt.s32.totalorder %s1750_s20, %s1750_s20 }
   0x8   :  { %p1757_p3 = por %p1756_p2, %p1755_p1 }
   0xa   :  { %p1758_p4 = pnand %p1757_p3, %p1751_p0 }
   0xc   :  { %1761 = shalt.err (!%p1758_p4)
}
   0xd   :  { %s1851_s21 = smov 512   ;;  %s1852_s22 = smov 32  }
   0xe   :  { %37 = dma.hbm_to_vmem [thread:$0]  %s1948_s1, 8192, %s32_s19, [#allocation6], %s1851_s21, %s1851_s21, %s1852_s22  }
   0xf   :  { %s1853_s25 = smov [#allocation2]  }
  0x10   :  { %s19_s26 = sshll.u32 %s1853_s25, 4  ;;  %s20_s26 = int_to_ptr.vmem [resolvable:$true] %s19_s26 }
  0x11   :  { %s1770_s27 = scalar_lea.vmem %s20_s26, 128  ;;  %p1775_p6 = scmp.lt.s32.totalorder %s20_s26, %s20_s26 }
  0x12   :  { %p1771_p5 = scmp.ne.s32.totalorder %s20_s26, %s1770_s27  ;;  %p1776_p7 = scmp.lt.s32.totalorder %s1770_s27, %s1770_s27 }
  0x14   :  { %p1777_p8 = por %p1776_p7, %p1775_p6 }
  0x16   :  { %p1778_p9 = pnand %p1777_p8, %p1771_p5 }
  0x18   :  { %1781 = shalt.err (!%p1778_p9)
}
  0x19   :  { %s1854_s28 = smov 64   ;;  %s1855_s29 = smov 4  }
  0x1a   :  { %25 = dma.hbm_to_vmem [thread:$0]  %s1947_s0, 128, %s20_s26, [#allocation3], %s1854_s28, %s1854_s28, %s1855_s29  }
  0x1b   :  { %s1856_s7 = smov [#allocation7]   ;;  %s1857_s9 = smov [#allocation8]  }
  0x1c   :  { %s44_s8 = sshll.u32 %s1856_s7, 4  ;;  %s53_s1 = sshll.u32 %s1857_s9, 4  ;;  %s45_s8 = int_to_ptr.vmem [resolvable:$true] %s44_s8  ;;  %s54_s1 = int_to_ptr.vmem [resolvable:$true] %s53_s1 }
  0x1d   :  { %s1790_s10 = scalar_lea.vmem %s45_s8, 128  ;;  %p1795_p11 = scmp.lt.s32.totalorder %s45_s8, %s45_s8 }
  0x1e   :  { %p1791_p10 = scmp.ne.s32.totalorder %s45_s8, %s1790_s10  ;;  %p1796_p12 = scmp.lt.s32.totalorder %s1790_s10, %s1790_s10 }
  0x20   :  { %p1797_p13 = por %p1796_p12, %p1795_p11 }
  0x22   :  { %p1798_p0 = pnand %p1797_p13, %p1791_p10 }
  0x24   :  { %1801 = shalt.err (!%p1798_p0)
}
  0x25   :  { %47 = dma.hbm_to_vmem [thread:$0]  %s1949_s2, 128, %s45_s8, [#allocation6]  }
  0x26   :  { %s1810_s13 = scalar_lea.vmem %s54_s1, 8192  ;;  %p1815_p2 = scmp.lt.s32.totalorder %s54_s1, %s54_s1 }
  0x27   :  { %p1811_p1 = scmp.ne.s32.totalorder %s54_s1, %s1810_s13  ;;  %p1816_p3 = scmp.lt.s32.totalorder %s1810_s13, %s1810_s13 }
  0x29   :  { %p1817_p4 = por %p1816_p3, %p1815_p2 }
  0x2b   :  { %p1818_p5 = pnand %p1817_p4, %p1811_p1 }
  0x2d   :  { %1821 = shalt.err (!%p1818_p5)
}
  0x2e   :  { %59 = dma.hbm_to_vmem [thread:$0]  %s1950_s3, 8192, %s54_s1, [#allocation9], %s1854_s28, %s1854_s28, %s1855_s29  }
  0x2f   :  { %1842 = dma.done.wait [#allocation3], 128  }
  0x30   :  { %1843 = vsyncadd [#allocation3], 4294967168 }
  0x31   :  { %1844 = dma.done.wait [#allocation6], 8320  }
  0x32   :  { %1845 = vsyncadd [#allocation6], 4294958976 }
  0x33   :  { %1846 = dma.done.wait [#allocation9], 8192  }
  0x34   :  { %1847 = vsyncadd [#allocation9], 4294959104  ;;  %v1858_v0 = vmov 0   ;;  %v133_v1 = vld [vmem:[#allocation5 + $0x1c0] sm:$0xff]  ;;  %v134_v3 = vld [vmem:[#allocation5 + $0x1c8] sm:$0xff] }
  0x35   :  { %541 = vmatprep.mubr.bf16.mxu0 %v1858_v0  ;;  %584 = vmatprep.mubr.bf16.mxu1 %v1858_v0  ;;  %v137_v2 = vld [vmem:[#allocation5 + $0x1e0] sm:$0xff]  ;;  %v138_v5 = vld [vmem:[#allocation5 + $0x1e8] sm:$0xff]  ;;  %v135_v60 = vld [vmem:[#allocation5 + $0x1d0] sm:$0xff] }
  0x36   :  { %v1505_v4 = vcombine.high %v133_v1, %v137_v2  ;;  %v1504_v6 = vcombine.low %v133_v1, %v137_v2  ;;  %v125_v7 = vld [vmem:[#allocation5 + $0x180] sm:$0xff]  ;;  %v1507_v9 = vcombine.high %v134_v3, %v138_v5  ;;  %v1506_v10 = vcombine.low %v134_v3, %v138_v5  ;;  %v126_v12 = vld [vmem:[#allocation5 + $0x188] sm:$0xff]  ;;  %v139_v63 = vld [vmem:[#allocation5 + $0x1f0] sm:$0xff] }
  0x37   :  { %v129_v8 = vld [vmem:[#allocation5 + $0x1a0] sm:$0xff]  ;;  %v130_v13 = vld [vmem:[#allocation5 + $0x1a8] sm:$0xff]  ;;  %v136_v2 = vld [vmem:[#allocation5 + $0x1d8] sm:$0xff] }
  0x38   :  { %v1497_v11 = vcombine.high %v125_v7, %v129_v8  ;;  %v117_v14 = vld [vmem:[#allocation5 + $0x140] sm:$0xff]  ;;  %509 = vmatprep.subr.bf16.mxu0 %v1505_v4  ;;  %v1499_v15 = vcombine.high %v126_v12, %v130_v13  ;;  %v118_v17 = vld [vmem:[#allocation5 + $0x148] sm:$0xff]  ;;  %552 = vmatprep.subr.bf16.mxu1 %v1507_v9  ;;  %v1496_v19 = vcombine.low %v125_v7, %v129_v8  ;;  %v140_v3 = vld [vmem:[#allocation5 + $0x1f8] sm:$0xff] }
  0x39   :  { %v121_v16 = vld [vmem:[#allocation5 + $0x160] sm:$0xff]  ;;  %v122_v18 = vld [vmem:[#allocation5 + $0x168] sm:$0xff]  ;;  %510 = vmatpush1.bf16.msra.mxu0 %v1504_v6  ;;  %553 = vmatpush1.bf16.msra.mxu1 %v1506_v10  ;;  %v1498_v20 = vcombine.low %v126_v12, %v130_v13  ;;  %v127_v5 = vld [vmem:[#allocation5 + $0x190] sm:$0xff]  ;;  %v1509_v8 = vcombine.high %v135_v60, %v139_v63  ;;  %v1511_v10 = vcombine.high %v136_v2, %v140_v3 }
  0x3a   :  { %511 = vmatprep.subr.bf16.mxu0 %v1497_v11  ;;  %v1489_v21 = vcombine.high %v117_v14, %v121_v16  ;;  %554 = vmatprep.subr.bf16.mxu1 %v1499_v15  ;;  %v1491_v22 = vcombine.high %v118_v17, %v122_v18  ;;  %v109_v23 = vld [vmem:[#allocation5 + $0x100] sm:$0xff]  ;;  %v110_v25 = vld [vmem:[#allocation5 + $0x108] sm:$0xff]  ;;  %v1488_v27 = vcombine.low %v117_v14, %v121_v16  ;;  %v1906_v7 = vld [vmem:[#allocation2] sm:$0xff]  }
  0x3b   :  { %v113_v24 = vld [vmem:[#allocation5 + $0x120] sm:$0xff]  ;;  %v114_v26 = vld [vmem:[#allocation5 + $0x128] sm:$0xff]  ;;  %v1490_v28 = vcombine.low %v118_v17, %v122_v18  ;;  %v131_v9 = vld [vmem:[#allocation5 + $0x1b0] sm:$0xff]  ;;  %v1508_v13 = vcombine.low %v135_v60, %v139_v63  ;;  %v1510_v15 = vcombine.low %v136_v2, %v140_v3 }
  0x3c   :  { %v1481_v29 = vcombine.high %v109_v23, %v113_v24  ;;  %v1483_v30 = vcombine.high %v110_v25, %v114_v26  ;;  %v101_v31 = vld [vmem:[#allocation5 + $0xc0] sm:$0xff]  ;;  %v102_v33 = vld [vmem:[#allocation5 + $0xc8] sm:$0xff]  ;;  %v1480_v35 = vcombine.low %v109_v23, %v113_v24  ;;  %v1482_v36 = vcombine.low %v110_v25, %v114_v26  ;;  %v128_v11 = vld [vmem:[#allocation5 + $0x198] sm:$0xff] }
  0x3d   :  { %512 = vmatpush1.bf16.msra.mxu0 %v1496_v19  ;;  %555 = vmatpush1.bf16.msra.mxu1 %v1498_v20  ;;  %v105_v32 = vld [vmem:[#allocation5 + $0xe0] sm:$0xff]  ;;  %v106_v34 = vld [vmem:[#allocation5 + $0xe8] sm:$0xff]  ;;  %v132_v12 = vld [vmem:[#allocation5 + $0x1b8] sm:$0xff]  ;;  %v1501_v16 = vcombine.high %v127_v5, %v131_v9 }
  0x3e   :  { %513 = vmatprep.subr.bf16.mxu0 %v1489_v21  ;;  %556 = vmatprep.subr.bf16.mxu1 %v1491_v22  ;;  %v1473_v37 = vcombine.high %v101_v31, %v105_v32  ;;  %v1475_v38 = vcombine.high %v102_v33, %v106_v34  ;;  %v93_v39 = vld [vmem:[#allocation5 + $0x80] sm:$0xff]  ;;  %v94_v41 = vld [vmem:[#allocation5 + $0x88] sm:$0xff]  ;;  %v1472_v43 = vcombine.low %v101_v31, %v105_v32  ;;  %v119_v14 = vld [vmem:[#allocation5 + $0x150] sm:$0xff] }
  0x3f   :  { %v97_v40 = vld [vmem:[#allocation5 + $0xa0] sm:$0xff]  ;;  %v98_v42 = vld [vmem:[#allocation5 + $0xa8] sm:$0xff]  ;;  %v1474_v44 = vcombine.low %v102_v33, %v106_v34  ;;  %v123_v17 = vld [vmem:[#allocation5 + $0x170] sm:$0xff]  ;;  %v1503_v18 = vcombine.high %v128_v11, %v132_v12  ;;  %v1500_v21 = vcombine.low %v127_v5, %v131_v9  ;;  %v1502_v23 = vcombine.low %v128_v11, %v132_v12 }
  0x40   :  { %v1465_v45 = vcombine.high %v93_v39, %v97_v40  ;;  %v1467_v46 = vcombine.high %v94_v41, %v98_v42  ;;  %v85_v47 = vld [vmem:[#allocation5 + $0x40] sm:$0xff]  ;;  %v86_v49 = vld [vmem:[#allocation5 + $0x48] sm:$0xff]  ;;  %v1464_v51 = vcombine.low %v93_v39, %v97_v40  ;;  %v1466_v52 = vcombine.low %v94_v41, %v98_v42  ;;  %v120_v19 = vld [vmem:[#allocation5 + $0x158] sm:$0xff] }
  0x41   :  { %514 = vmatpush1.bf16.msra.mxu0 %v1488_v27  ;;  %557 = vmatpush1.bf16.msra.mxu1 %v1490_v28  ;;  %v89_v48 = vld [vmem:[#allocation5 + $0x60] sm:$0xff]  ;;  %v90_v50 = vld [vmem:[#allocation5 + $0x68] sm:$0xff]  ;;  %v124_v20 = vld [vmem:[#allocation5 + $0x178] sm:$0xff]  ;;  %v1493_v24 = vcombine.high %v119_v14, %v123_v17 }
  0x42   :  { %515 = vmatprep.subr.bf16.mxu0 %v1481_v29  ;;  %558 = vmatprep.subr.bf16.mxu1 %v1483_v30  ;;  %v1457_v53 = vcombine.high %v85_v47, %v89_v48  ;;  %v77_v54 = vld [vmem:[#allocation5] sm:$0xff]  ;;  %v1459_v56 = vcombine.high %v86_v49, %v90_v50  ;;  %v78_v57 = vld [vmem:[#allocation5 + $0x8] sm:$0xff]  ;;  %v1456_v59 = vcombine.low %v85_v47, %v89_v48  ;;  %v111_v22 = vld [vmem:[#allocation5 + $0x110] sm:$0xff] }
  0x43   :  { %v81_v55 = vld [vmem:[#allocation5 + $0x20] sm:$0xff]  ;;  %v82_v58 = vld [vmem:[#allocation5 + $0x28] sm:$0xff]  ;;  %v1458_v61 = vcombine.low %v86_v49, %v90_v50  ;;  %v115_v25 = vld [vmem:[#allocation5 + $0x130] sm:$0xff]  ;;  %v1495_v26 = vcombine.high %v120_v19, %v124_v20  ;;  %v1492_v29 = vcombine.low %v119_v14, %v123_v17  ;;  %v1494_v32 = vcombine.low %v120_v19, %v124_v20 }
  0x44   :  { %v1449_v62 = vcombine.high %v77_v54, %v81_v55  ;;  %v1451_v1 = vcombine.high %v78_v57, %v82_v58  ;;  %v1448_v4 = vcombine.low %v77_v54, %v81_v55  ;;  %v1450_v6 = vcombine.low %v78_v57, %v82_v58  ;;  %v112_v27 = vld [vmem:[#allocation5 + $0x118] sm:$0xff]  ;;  %v103_v30 = vld [vmem:[#allocation5 + $0xd0] sm:$0xff]  ;;  %v1679_v3 = vld [vmem:[#allocation8 + $0xf8] sm:$0xff]  }
  0x45   :  { %516 = vmatpush1.bf16.msra.mxu0 %v1480_v35  ;;  %559 = vmatpush1.bf16.msra.mxu1 %v1482_v36  ;;  %v116_v28 = vld [vmem:[#allocation5 + $0x138] sm:$0xff]  ;;  %v107_v31 = vld [vmem:[#allocation5 + $0xf0] sm:$0xff]  ;;  %v1485_v33 = vcombine.high %v111_v22, %v115_v25  ;;  %v1680_v5 = vld [vmem:[#allocation8 + $0x38] sm:$0xff]  }
  0x46   :  { %517 = vmatprep.subr.bf16.mxu0 %v1473_v37  ;;  %560 = vmatprep.subr.bf16.mxu1 %v1475_v38  ;;  %v104_v34 = vld [vmem:[#allocation5 + $0xd8] sm:$0xff]  ;;  %v1487_v36 = vcombine.high %v112_v27, %v116_v28  ;;  %v1484_v37 = vcombine.low %v111_v22, %v115_v25  ;;  %v95_v38 = vld [vmem:[#allocation5 + $0x90] sm:$0xff]  ;;  %v1486_v40 = vcombine.low %v112_v27, %v116_v28  ;;  %v1691_v17 = vld [vmem:[#allocation8 + $0xe0] sm:$0xff]  }
  0x47   :  { %v108_v35 = vld [vmem:[#allocation5 + $0xf8] sm:$0xff]  ;;  %v99_v39 = vld [vmem:[#allocation5 + $0xb0] sm:$0xff]  ;;  %v1693_v19 = vld [vmem:[#allocation8 + $0xa0] sm:$0xff]  }
  0x48   :  { %v96_v41 = vld [vmem:[#allocation5 + $0x98] sm:$0xff]  ;;  %v1478_v47 = vcombine.low %v104_v34, %v108_v35  ;;  %v1469_v48 = vcombine.high %v95_v38, %v99_v39  ;;  %v83_v54 = vld [vmem:[#allocation5 + $0x30] sm:$0xff]  ;;  %v1694_v20 = vld [vmem:[#allocation8 + $0x58] sm:$0xff]  }
  0x49   :  { %518 = vmatpush1.bf16.msra.mxu0 %v1472_v43  ;;  %561 = vmatpush1.bf16.msra.mxu1 %v1474_v44  ;;  %v100_v42 = vld [vmem:[#allocation5 + $0xb8] sm:$0xff]  ;;  %v1479_v43 = vcombine.high %v104_v34, %v108_v35  ;;  %v1476_v44 = vcombine.low %v103_v30, %v107_v31  ;;  %v1686_v12 = vld [vmem:[#allocation8 + $0x68] sm:$0xff]   ;;  %v1697_v22 = vld [vmem:[#allocation8 + $0x98] sm:$0xff]  }
  0x4a   :  { %519 = vmatprep.subr.bf16.mxu0 %v1465_v45  ;;  %562 = vmatprep.subr.bf16.mxu1 %v1467_v46  ;;  %v87_v45 = vld [vmem:[#allocation5 + $0x50] sm:$0xff]  ;;  %v88_v49 = vld [vmem:[#allocation5 + $0x58] sm:$0xff]  ;;  %v1470_v55 = vcombine.low %v96_v41, %v100_v42  ;;  %v1709_v34 = vld [vmem:[#allocation8 + $0x80] sm:$0xff]  }
  0x4b   :  { %v91_v46 = vld [vmem:[#allocation5 + $0x70] sm:$0xff]  ;;  %v92_v50 = vld [vmem:[#allocation5 + $0x78] sm:$0xff]  ;;  %v1710_v35 = vld [vmem:[#allocation8 + $0x178] sm:$0xff]  }
  0x4c   :  { %v80_v57 = vld [vmem:[#allocation5 + $0x18] sm:$0xff]  ;;  %v1460_v60 = vcombine.low %v87_v45, %v91_v46  ;;  %v1688_v14 = vld [vmem:[#allocation8 + $0x28] sm:$0xff]  }
  0x4d   :  { %520 = vmatpush1.bf16.msra.mxu0 %v1464_v51  ;;  %563 = vmatpush1.bf16.msra.mxu1 %v1466_v52  ;;  %v1471_v51 = vcombine.high %v96_v41, %v100_v42  ;;  %v1468_v52 = vcombine.low %v95_v38, %v99_v39  ;;  %v84_v58 = vld [vmem:[#allocation5 + $0x38] sm:$0xff]  ;;  %v1702_v27 = vld [vmem:[#allocation8 + $0x48] sm:$0xff]  }
  0x4e   :  { %521 = vmatprep.subr.bf16.mxu0 %v1457_v53  ;;  %564 = vmatprep.subr.bf16.mxu1 %v1459_v56  ;;  %v79_v53 = vld [vmem:[#allocation5 + $0x10] sm:$0xff]  ;;  %v1461_v56 = vcombine.high %v87_v45, %v91_v46  ;;  %v1455_v63 = vcombine.high %v80_v57, %v84_v58  ;;  %v1683_v9 = vld [vmem:[#allocation8 + $0xf0] sm:$0xff]  }
  0x4f   :  { %v1452_v2 = vcombine.low %v79_v53, %v83_v54  ;;  %v1685_v11 = vld [vmem:[#allocation8 + $0xb0] sm:$0xff]   ;;  %v1703_v28 = vld [vmem:[#allocation8 + $0xc8] sm:$0xff]  }
  0x50   :  { %v1700_v25 = vld [vmem:[#allocation8 + $0x10] sm:$0xff]  }
  0x51   :  { %522 = vmatpush1.bf16.msra.mxu0 %v1456_v59  ;;  %565 = vmatpush1.bf16.msra.mxu1 %v1458_v61  ;;  %v1463_v59 = vcombine.high %v88_v49, %v92_v50  ;;  %v1462_v61 = vcombine.low %v88_v49, %v92_v50 }
  0x52   :  { %523 = vmatprep.subr.bf16.mxu0 %v1449_v62  ;;  %566 = vmatprep.subr.bf16.mxu1 %v1451_v1  ;;  %v1453_v62 = vcombine.high %v79_v53, %v83_v54  ;;  %v1678_v1 = vld [vmem:[#allocation8 + $0x78] sm:$0xff]  }
  0x55   :  { %524 = vmatpush1.bf16.msra.mxu0 %v1448_v4  ;;  %567 = vmatpush1.bf16.msra.mxu1 %v1450_v6  ;;  %v1454_v4 = vcombine.low %v80_v57, %v84_v58  ;;  %v1681_v6 = vld [vmem:[#allocation8 + $0xb8] sm:$0xff]  }
  0x56   :  { %595 = vmatprep.subr.bf16.mxu0 %v1509_v8  ;;  %638 = vmatprep.subr.bf16.mxu1 %v1511_v10  ;;  %v1682_v8 = vld [vmem:[#allocation8 + $0x70] sm:$0xff]  }
  0x57   :  { %v1684_v10 = vld [vmem:[#allocation8 + $0x30] sm:$0xff]  }
  0x58   :  { %542 = vmatmul.mubr.bf16.vlgmr.msra.gmra.mxu0 %v1906_v7  ;;  %585 = vmatmul.mubr.bf16.vlgmr.msra.gmra.mxu1 %v1906_v7 }
  0x59   :  { %596 = vmatpush1.bf16.msra.mxu0 %v1508_v13  ;;  %639 = vmatpush1.bf16.msra.mxu1 %v1510_v15  ;;  %v1687_v13 = vld [vmem:[#allocation8 + $0xe8] sm:$0xff]  }
  0x5a   :  { %597 = vmatprep.subr.bf16.mxu0 %v1501_v16  ;;  %640 = vmatprep.subr.bf16.mxu1 %v1503_v18  ;;  %v1689_v15 = vld [vmem:[#allocation8 + $0xa8] sm:$0xff]   ;;  %v1690_v16 = vld [vmem:[#allocation8 + $0x60] sm:$0xff]  }
  0x5b   :  { %627 = vmatprep.mubr.bf16.mxu0 %v1858_v0  ;;  %670 = vmatprep.mubr.bf16.mxu1 %v1858_v0  ;;  %v1477_v0 = vcombine.high %v103_v30, %v107_v31  ;;  %v1692_v18 = vld [vmem:[#allocation8 + $0x20] sm:$0xff]   ;;  %v1705_v30 = vld [vmem:[#allocation8 + $0x88] sm:$0xff]  }
  0x5c   :  { %v1706_v31 = vld [vmem:[#allocation8 + $0x40] sm:$0xff]  }
  0x5d   :  { %598 = vmatpush1.bf16.msra.mxu0 %v1500_v21  ;;  %641 = vmatpush1.bf16.msra.mxu1 %v1502_v23  ;;  %v1696_v21 = vld [vmem:[#allocation8 + $0x18] sm:$0xff]   ;;  %v1698_v23 = vld [vmem:[#allocation8 + $0x50] sm:$0xff]  }
  0x5e   :  { %599 = vmatprep.subr.bf16.mxu0 %v1493_v24  ;;  %642 = vmatprep.subr.bf16.mxu1 %v1495_v26  ;;  %v1699_v24 = vld [vmem:[#allocation8 + $0xd0] sm:$0xff]  }
  0x5f   :  { %v1701_v26 = vld [vmem:[#allocation8 + $0x90] sm:$0xff]  }
  0x61   :  { %600 = vmatpush1.bf16.msra.mxu0 %v1492_v29  ;;  %643 = vmatpush1.bf16.msra.mxu1 %v1494_v32  ;;  %v1704_v29 = vld [vmem:[#allocation8 + $0x8] sm:$0xff]   ;;  %v1707_v32 = vld [vmem:[#allocation8 + $0xc0] sm:$0xff]  }
  0x62   :  { %601 = vmatprep.subr.bf16.mxu0 %v1485_v33  ;;  %644 = vmatprep.subr.bf16.mxu1 %v1487_v36  ;;  %v1708_v33 = vld [vmem:[#allocation8] sm:$0xff]   ;;  %v1711_v36 = vld [vmem:[#allocation8 + $0x1f8] sm:$0xff]  }
  0x65   :  { %602 = vmatpush1.bf16.msra.mxu0 %v1484_v37  ;;  %645 = vmatpush1.bf16.msra.mxu1 %v1486_v40  ;;  %v143_v37 = vlaneseq  ;;  %v1917_v40 = vld [vmem:[#allocation7] sm:$0xff] }
  0x66   :  { %603 = vmatprep.subr.bf16.mxu0 %v1477_v0  ;;  %646 = vmatprep.subr.bf16.mxu1 %v1479_v43 }
  0x67   :  { %v1914_v38 = vshrl.u32 %v143_v37, 7 }
  0x69   :  { %604 = vmatpush1.bf16.msra.mxu0 %v1476_v44  ;;  %647 = vmatpush1.bf16.msra.mxu1 %v1478_v47  ;;  %v145_v39 = vsub.s32 0, %v1914_v38  ;;  %v149_v0 = vsub.s32 1, %v1914_v38  ;;  %v157_v41 = vsub.s32 3, %v1914_v38  ;;  %v153_v42 = vsub.s32 2, %v1914_v38 }
  0x6a   :  { %605 = vmatprep.subr.bf16.mxu0 %v1469_v48  ;;  %648 = vmatprep.subr.bf16.mxu1 %v1471_v51  ;;  %v165_v37 = vsub.s32 5, %v1914_v38 }
  0x6b   :  { %v146_v43 = vrot.slane %v1917_v40, %v145_v39  ;;  %v150_v44 = vrot.slane %v1917_v40, %v149_v0  ;;  %v158_v46 = vrot.slane %v1917_v40, %v157_v41  ;;  %v154_v47 = vrot.slane %v1917_v40, %v153_v42  ;;  %v1728_v39 = vld [vmem:[#allocation8 + $0x118] sm:$0xff]  }
  0x6c   :  { %v173_v0 = vsub.s32 7, %v1914_v38  ;;  %v169_v41 = vsub.s32 6, %v1914_v38  ;;  %v1729_v42 = vld [vmem:[#allocation8 + $0x198] sm:$0xff]  }
  0x6d   :  { %606 = vmatpush1.bf16.msra.mxu0 %v1468_v52  ;;  %649 = vmatpush1.bf16.msra.mxu1 %v1470_v55 }
  0x6e   :  { %607 = vmatprep.subr.bf16.mxu0 %v1461_v56  ;;  %650 = vmatprep.subr.bf16.mxu1 %v1463_v59 }
  0x71   :  { %608 = vmatpush1.bf16.msra.mxu0 %v1460_v60  ;;  %651 = vmatpush1.bf16.msra.mxu1 %v1462_v61 }
  0x72   :  { %609 = vmatprep.subr.bf16.mxu0 %v1453_v62  ;;  %652 = vmatprep.subr.bf16.mxu1 %v1455_v63 }
  0x75   :  { %610 = vmatpush1.bf16.msra.mxu0 %v1452_v2  ;;  %653 = vmatpush1.bf16.msra.mxu1 %v1454_v4 }
  0x76   :  { %1577 = vmatprep.subr.bf16.mxu0 %v1678_v1  ;;  %1599 = vmatprep.subr.bf16.mxu1 %v1679_v3 }
  0x78   :  { %628 = vmatmul.mubr.bf16.vlgmr.msra.gmra.mxu0 %v1906_v7  ;;  %671 = vmatmul.mubr.bf16.vlgmr.msra.gmra.mxu1 %v1906_v7  ;;  %v1695_v7 = vld [vmem:[#allocation8 + $0xd8] sm:$0xff]  }
  0x79   :  { %1578 = vmatpush3.bf16.msra.mxu0 %v1680_v5  ;;  %1600 = vmatpush3.bf16.msra.mxu1 %v1681_v6 }
  0x7a   :  { %1579 = vmatprep.subr.bf16.mxu0 %v1682_v8  ;;  %1601 = vmatprep.subr.bf16.mxu1 %v1683_v9 }
  0x7d   :  { %1580 = vmatpush3.bf16.msra.mxu0 %v1684_v10  ;;  %1602 = vmatpush3.bf16.msra.mxu1 %v1685_v11 }
  0x7e   :  { %1581 = vmatprep.subr.bf16.mxu0 %v1686_v12  ;;  %1603 = vmatprep.subr.bf16.mxu1 %v1687_v13 }
  0x81   :  { %1582 = vmatpush3.bf16.msra.mxu0 %v1688_v14  ;;  %1604 = vmatpush3.bf16.msra.mxu1 %v1689_v15 }
  0x82   :  { %1583 = vmatprep.subr.bf16.mxu0 %v1690_v16  ;;  %1605 = vmatprep.subr.bf16.mxu1 %v1691_v17  ;;  %v1712_v17 = vld [vmem:[#allocation8 + $0x138] sm:$0xff]  }
  0x85   :  { %1584 = vmatpush3.bf16.msra.mxu0 %v1692_v18  ;;  %1606 = vmatpush3.bf16.msra.mxu1 %v1693_v19 }
  0x86   :  { %1585 = vmatprep.subr.bf16.mxu0 %v1694_v20  ;;  %1607 = vmatprep.subr.bf16.mxu1 %v1695_v7  ;;  %v1713_v7 = vld [vmem:[#allocation8 + $0x1b8] sm:$0xff]  }
  0x89   :  { %1586 = vmatpush3.bf16.msra.mxu0 %v1696_v21  ;;  %1608 = vmatpush3.bf16.msra.mxu1 %v1697_v22  ;;  %v1714_v21 = vld [vmem:[#allocation8 + $0x170] sm:$0xff]  }
  0x8a   :  { %1587 = vmatprep.subr.bf16.mxu0 %v1698_v23  ;;  %1609 = vmatprep.subr.bf16.mxu1 %v1699_v24  ;;  %v1715_v23 = vld [vmem:[#allocation8 + $0x1f0] sm:$0xff]  }
  0x8b   :  { %v1716_v24 = vld [vmem:[#allocation8 + $0x130] sm:$0xff]  }
  0x8d   :  { %1588 = vmatpush3.bf16.msra.mxu0 %v1700_v25  ;;  %1610 = vmatpush3.bf16.msra.mxu1 %v1701_v26  ;;  %v1717_v25 = vld [vmem:[#allocation8 + $0x1b0] sm:$0xff]   ;;  %v1718_v26 = vld [vmem:[#allocation8 + $0x168] sm:$0xff]  }
  0x8e   :  { %1589 = vmatprep.subr.bf16.mxu0 %v1702_v27  ;;  %1611 = vmatprep.subr.bf16.mxu1 %v1703_v28  ;;  %v1719_v27 = vld [vmem:[#allocation8 + $0x1e8] sm:$0xff]  }
  0x8f   :  { %v1720_v28 = vld [vmem:[#allocation8 + $0x128] sm:$0xff]  }
  0x91   :  { %1590 = vmatpush3.bf16.msra.mxu0 %v1704_v29  ;;  %1612 = vmatpush3.bf16.msra.mxu1 %v1705_v30  ;;  %v1721_v29 = vld [vmem:[#allocation8 + $0x1a8] sm:$0xff]   ;;  %v1722_v30 = vld [vmem:[#allocation8 + $0x160] sm:$0xff]  }
  0x92   :  { %1591 = vmatprep.subr.bf16.mxu0 %v1706_v31  ;;  %1613 = vmatprep.subr.bf16.mxu1 %v1707_v32  ;;  %v1723_v31 = vld [vmem:[#allocation8 + $0x1e0] sm:$0xff]  }
  0x93   :  { %v1724_v32 = vld [vmem:[#allocation8 + $0x120] sm:$0xff]  }
  0x95   :  { %1592 = vmatpush3.bf16.msra.mxu0 %v1708_v33  ;;  %1614 = vmatpush3.bf16.msra.mxu1 %v1709_v34  ;;  %v1725_v33 = vld [vmem:[#allocation8 + $0x1a0] sm:$0xff]   ;;  %v1726_v34 = vld [vmem:[#allocation8 + $0x158] sm:$0xff]  }
  0x96   :  { %1621 = vmatprep.subr.bf16.mxu0 %v1710_v35  ;;  %1643 = vmatprep.subr.bf16.mxu1 %v1711_v36  ;;  %v1727_v35 = vld [vmem:[#allocation8 + $0x1d8] sm:$0xff]   ;;  %v161_v36 = vsub.s32 4, %v1914_v38  ;;  %v1734_v38 = vld [vmem:[#allocation8 + $0x148] sm:$0xff]  }
 0x118   :  { %v543_v45 = vpop.f32.mrf.mxu0  ;;  %v586_v48 = vpop.f32.mrf.mxu1 }
 0x119   :  { %v544_v49 = vadd.f32 %v543_v45, %v146_v43  ;;  %v587_v55 = vadd.f32 %v586_v48, %v154_v47  ;;  %v1731_v45 = vld [vmem:[#allocation8 + $0x1d0] sm:$0xff]   ;;  %v174_v48 = vrot.slane %v1917_v40, %v173_v0 }
 0x11a   :  { %v545_v50 = vpop.f32.mrf.mxu0  ;;  %v588_v52 = vpop.f32.mrf.mxu1 }
 0x11b   :  { %v546_v51 = vadd.f32 %v545_v50, %v150_v44  ;;  %v589_v53 = vadd.f32 %v588_v52, %v158_v46  ;;  %vm681_vm0 = vcmp.ge.f32.partialorder %v544_v49, 0.0  ;;  %v697_v58 = vmul.f32 0.01, %v544_v49  ;;  %v1733_v52 = vld [vmem:[#allocation8 + $0x190] sm:$0xff]  }
 0x11c   :  { %v547_v54 = vpop.f32.mrf.mxu0  ;;  %v590_v57 = vpop.f32.mrf.mxu1  ;;  %v699_v5 = vmul.f32 0.01, %v587_v55  ;;  %vm683_vm6 = vcmp.ge.f32.partialorder %v587_v55, 0.0  ;;  %v170_v50 = vrot.slane %v1917_v40, %v169_v41 }
 0x11d   :  { %v548_v56 = vadd.f32 %v547_v54, %v146_v43  ;;  %vm682_vm1 = vcmp.ge.f32.partialorder %v546_v51, 0.0  ;;  %v591_v59 = vadd.f32 %v590_v57, %v154_v47  ;;  %v698_v61 = vmul.f32 0.01, %v546_v51  ;;  %v1730_v43 = vld [vmem:[#allocation8 + $0x150] sm:$0xff]  }
 0x11e   :  { %v549_v60 = vpop.f32.mrf.mxu0  ;;  %v592_v1 = vpop.f32.mrf.mxu1  ;;  %v700_v2 = vmul.f32 0.01, %v589_v53  ;;  %vm684_vm4 = vcmp.ge.f32.partialorder %v589_v53, 0.0  ;;  %v713_v13 = vsel %vm681_vm0, %v544_v49, %v697_v58  ;;  %v715_v18 = vsel %vm683_vm6, %v587_v55, %v699_v5  ;;  %v1732_v49 = vld [vmem:[#allocation8 + $0x110] sm:$0xff]   ;;  %v1735_v55 = vld [vmem:[#allocation8 + $0x1c8] sm:$0xff]   ;;  %v1739_v5 = vld [vmem:[#allocation8 + $0x1c0] sm:$0xff]  }
 0x11f   :  { %vm689_vm2 = vcmp.ge.f32.partialorder %v548_v56, 0.0  ;;  %v705_v62 = vmul.f32 0.01, %v548_v56  ;;  %v550_v63 = vadd.f32 %v549_v60, %v150_v44  ;;  %vm691_vm3 = vcmp.ge.f32.partialorder %v591_v59, 0.0  ;;  %v1736_v60 = vld [vmem:[#allocation8 + $0x108] sm:$0xff]  }
 0x120   :  { %v707_v3 = vmul.f32 0.01, %v591_v59  ;;  %v593_v4 = vadd.f32 %v592_v1, %v158_v46  ;;  %v714_v11 = vsel %vm682_vm1, %v546_v51, %v698_v61  ;;  %v716_v15 = vsel %vm684_vm4, %v589_v53, %v700_v2  ;;  %v1738_v1 = vld [vmem:[#allocation8 + $0x140] sm:$0xff]  }
 0x121   :  { %vm690_vm5 = vcmp.ge.f32.partialorder %v550_v63, 0.0  ;;  %v706_v6 = vmul.f32 0.01, %v550_v63  ;;  %v721_v8 = vsel %vm689_vm2, %v548_v56, %v705_v62  ;;  %v162_v44 = vrot.slane %v1917_v40, %v161_v36 }
 0x122   :  { %vm692_vm7 = vcmp.ge.f32.partialorder %v593_v4, 0.0  ;;  %v708_v9 = vmul.f32 0.01, %v593_v4  ;;  %v723_v10 = vsel %vm691_vm3, %v591_v59, %v707_v3  ;;  %v729_v19 = vpack.c.bf16 %v721_v8, %v713_v13 }
 0x123   :  { %v722_v12 = vsel %vm690_vm5, %v550_v63, %v706_v6  ;;  %v731_v22 = vpack.c.bf16 %v723_v10, %v715_v18  ;;  %v166_v46 = vrot.slane %v1917_v40, %v165_v37  ;;  %v1737_v40 = vld [vmem:[#allocation8 + $0x188] sm:$0xff]   ;;  %v1512_v37 = vld [vmem:[%s1951_s4] ss:$0 sm:$0xff]  ;;  %s1859_s4 = smov [#allocation10]  }
 0x124   :  { %v730_v14 = vpack.c.bf16 %v722_v12, %v714_v11  ;;  %v724_v16 = vsel %vm692_vm7, %v593_v4, %v708_v9  ;;  %v1740_v11 = vld [vmem:[#allocation8 + $0x100] sm:$0xff]   ;;  %s1433_s15 = sshll.u32 %s1859_s4, 4  ;;  %s1434_s15 = int_to_ptr.vmem [resolvable:$true] %s1433_s15 }
 0x125   :  { %v732_v20 = vpack.c.bf16 %v724_v16, %v716_v15  ;;  %v1741_v15 = vld [vmem:[#allocation8 + $0x180] sm:$0xff]   ;;  %s1822_s16 = scalar_lea.vmem %s1434_s15, 256  ;;  %p1827_p7 = scmp.lt.s32.totalorder %s1434_s15, %s1434_s15 }
 0x126   :  { %1288 = vmatprep.mubr.bf16.mxu0 %v730_v14  ;;  %p1823_p6 = scmp.ne.s32.totalorder %s1434_s15, %s1822_s16  ;;  %p1828_p8 = scmp.lt.s32.totalorder %s1822_s16, %s1822_s16 }
 0x127   :  { %1329 = vmatprep.mubr.bf16.mxu1 %v732_v20  ;;  %1289 = vmatmul.mubr.bf16.vlgmr.msra.gmra.mxu0 %v729_v19 }
 0x128   :  { %1330 = vmatmul.mubr.bf16.vlgmr.msra.gmra.mxu1 %v731_v22  ;;  %1622 = vmatpush3.bf16.msra.mxu0 %v1712_v17  ;;  %p1829_p9 = por %p1828_p8, %p1827_p7 }
 0x129   :  { %1644 = vmatpush3.bf16.msra.mxu1 %v1713_v7  ;;  %1623 = vmatprep.subr.bf16.mxu0 %v1714_v21 }
 0x12a   :  { %1645 = vmatprep.subr.bf16.mxu1 %v1715_v23  ;;  %p1830_p10 = pnand %p1829_p9, %p1823_p6 }
 0x12c   :  { %1624 = vmatpush3.bf16.msra.mxu0 %v1716_v24 }
 0x12d   :  { %1646 = vmatpush3.bf16.msra.mxu1 %v1717_v25  ;;  %1625 = vmatprep.subr.bf16.mxu0 %v1718_v26 }
 0x12e   :  { %1647 = vmatprep.subr.bf16.mxu1 %v1719_v27 }
 0x130   :  { %1626 = vmatpush3.bf16.msra.mxu0 %v1720_v28 }
 0x131   :  { %1648 = vmatpush3.bf16.msra.mxu1 %v1721_v29  ;;  %1627 = vmatprep.subr.bf16.mxu0 %v1722_v30 }
 0x132   :  { %1649 = vmatprep.subr.bf16.mxu1 %v1723_v31 }
 0x134   :  { %1628 = vmatpush3.bf16.msra.mxu0 %v1724_v32 }
 0x135   :  { %1650 = vmatpush3.bf16.msra.mxu1 %v1725_v33  ;;  %1629 = vmatprep.subr.bf16.mxu0 %v1726_v34 }
 0x136   :  { %1651 = vmatprep.subr.bf16.mxu1 %v1727_v35 }
 0x138   :  { %v629_v47 = vpop.f32.mrf.mxu0  ;;  %1630 = vmatpush3.bf16.msra.mxu0 %v1728_v39  ;;  %v672_v51 = vpop.f32.mrf.mxu1 }
 0x139   :  { %1652 = vmatpush3.bf16.msra.mxu1 %v1729_v42  ;;  %1631 = vmatprep.subr.bf16.mxu0 %v1730_v43  ;;  %v630_v53 = vadd.f32 %v629_v47, %v162_v44  ;;  %v673_v61 = vadd.f32 %v672_v51, %v170_v50 }
 0x13a   :  { %v631_v54 = vpop.f32.mrf.mxu0  ;;  %1653 = vmatprep.subr.bf16.mxu1 %v1731_v45  ;;  %v674_v57 = vpop.f32.mrf.mxu1 }
 0x13b   :  { %v632_v56 = vadd.f32 %v631_v54, %v166_v46  ;;  %v675_v58 = vadd.f32 %v674_v57, %v174_v48  ;;  %vm685_vm8 = vcmp.ge.f32.partialorder %v630_v53, 0.0  ;;  %v701_v2 = vmul.f32 0.01, %v630_v53 }
 0x13c   :  { %v633_v59 = vpop.f32.mrf.mxu0  ;;  %1632 = vmatpush3.bf16.msra.mxu0 %v1732_v49  ;;  %v676_v63 = vpop.f32.mrf.mxu1  ;;  %v703_v16 = vmul.f32 0.01, %v673_v61  ;;  %vm687_vm14 = vcmp.ge.f32.partialorder %v673_v61, 0.0 }
 0x13d   :  { %v634_v62 = vadd.f32 %v633_v59, %v162_v44  ;;  %1654 = vmatpush3.bf16.msra.mxu1 %v1733_v52  ;;  %1633 = vmatprep.subr.bf16.mxu0 %v1734_v38  ;;  %vm686_vm9 = vcmp.ge.f32.partialorder %v632_v56, 0.0  ;;  %v677_v3 = vadd.f32 %v676_v63, %v170_v50  ;;  %v702_v6 = vmul.f32 0.01, %v632_v56 }
 0x13e   :  { %v635_v4 = vpop.f32.mrf.mxu0  ;;  %1655 = vmatprep.subr.bf16.mxu1 %v1735_v55  ;;  %v678_v10 = vpop.f32.mrf.mxu1  ;;  %v704_v12 = vmul.f32 0.01, %v675_v58  ;;  %vm688_vm12 = vcmp.ge.f32.partialorder %v675_v58, 0.0  ;;  %v717_v22 = vsel %vm685_vm8, %v630_v53, %v701_v2  ;;  %v719_v26 = vsel %vm687_vm14, %v673_v61, %v703_v16 }
 0x13f   :  { %vm693_vm10 = vcmp.ge.f32.partialorder %v634_v62, 0.0  ;;  %v709_v8 = vmul.f32 0.01, %v634_v62  ;;  %v636_v9 = vadd.f32 %v635_v4, %v166_v46  ;;  %vm695_vm11 = vcmp.ge.f32.partialorder %v677_v3, 0.0 }
 0x140   :  { %v711_v13 = vmul.f32 0.01, %v677_v3  ;;  %v679_v14 = vadd.f32 %v678_v10, %v174_v48  ;;  %1634 = vmatpush3.bf16.msra.mxu0 %v1736_v60  ;;  %v718_v7 = vsel %vm686_vm9, %v632_v56, %v702_v6  ;;  %v720_v24 = vsel %vm688_vm12, %v675_v58, %v704_v12 }
 0x141   :  { %vm694_vm13 = vcmp.ge.f32.partialorder %v636_v9, 0.0  ;;  %v710_v17 = vmul.f32 0.01, %v636_v9  ;;  %1656 = vmatpush3.bf16.msra.mxu1 %v1737_v40  ;;  %1635 = vmatprep.subr.bf16.mxu0 %v1738_v1  ;;  %v725_v18 = vsel %vm693_vm10, %v634_v62, %v709_v8 }
 0x142   :  { %vm696_vm15 = vcmp.ge.f32.partialorder %v679_v14, 0.0  ;;  %v712_v19 = vmul.f32 0.01, %v679_v14  ;;  %1657 = vmatprep.subr.bf16.mxu1 %v1739_v5  ;;  %v727_v20 = vsel %vm695_vm11, %v677_v3, %v711_v13  ;;  %v733_v27 = vpack.c.bf16 %v725_v18, %v717_v22 }
 0x143   :  { %v726_v21 = vsel %vm694_vm13, %v636_v9, %v710_v17  ;;  %v735_v29 = vpack.c.bf16 %v727_v20, %v719_v26 }
 0x144   :  { %1636 = vmatpush3.bf16.msra.mxu0 %v1740_v11  ;;  %v734_v23 = vpack.c.bf16 %v726_v21, %v718_v7  ;;  %v728_v25 = vsel %vm696_vm15, %v679_v14, %v712_v19 }
 0x145   :  { %1658 = vmatpush3.bf16.msra.mxu1 %v1741_v15  ;;  %v736_v28 = vpack.c.bf16 %v728_v25, %v720_v24 }
 0x146   :  { %1370 = vmatprep.mubr.bf16.mxu0 %v734_v23 }
 0x147   :  { %1411 = vmatprep.mubr.bf16.mxu1 %v736_v28  ;;  %1371 = vmatmul.mubr.bf16.vlgmr.msra.gmra.mxu0 %v733_v27 }
 0x148   :  { %1412 = vmatmul.mubr.bf16.vlgmr.msra.gmra.mxu1 %v735_v29 }
 0x1e7   :  { %v1593_v30 = vpop.f32.mrf.mxu0 }
 0x1e8   :  { %v1615_v31 = vpop.f32.mrf.mxu1 }
 0x1e9   :  { %v1594_v32 = vpop.f32.mrf.mxu0 }
 0x1ea   :  { %v1616_v33 = vpop.f32.mrf.mxu1  ;;  %v1595_v35 = vadd.f32 %v1594_v32, %v1593_v30 }
 0x1eb   :  { %v1596_v34 = vpop.f32.mrf.mxu0  ;;  %v1617_v44 = vadd.f32 %v1616_v33, %v1615_v31 }
 0x1ec   :  { %v1618_v36 = vpop.f32.mrf.mxu1  ;;  %v1291_v0 = vadd.f32 %v1595_v35, %v1512_v37 }
 0x1ed   :  { %v1597_v39 = vpop.f32.mrf.mxu0 }
 0x1ee   :  { %v1598_v41 = vadd.f32 %v1597_v39, %v1596_v34  ;;  %v1619_v42 = vpop.f32.mrf.mxu1  ;;  %v1332_v47 = vadd.f32 %v1617_v44, %v1291_v0 }
 0x1ef   :  { %v1620_v52 = vadd.f32 %v1619_v42, %v1618_v36 }
 0x1f0   :  { %v1294_v48 = vadd.f32 %v1598_v41, %v1512_v37 }
 0x1f2   :  { %v1335_v56 = vadd.f32 %v1620_v52, %v1294_v48 }
 0x207   :  { %v1637_v43 = vpop.f32.mrf.mxu0 }
 0x208   :  { %v1659_v45 = vpop.f32.mrf.mxu1 }
 0x209   :  { %v1638_v46 = vpop.f32.mrf.mxu0 }
 0x20a   :  { %v1639_v49 = vadd.f32 %v1638_v46, %v1637_v43  ;;  %v1660_v50 = vpop.f32.mrf.mxu1 }
 0x20b   :  { %v1640_v51 = vpop.f32.mrf.mxu0  ;;  %v1661_v53 = vadd.f32 %v1660_v50, %v1659_v45 }
 0x20c   :  { %v1373_v38 = vadd.f32 %v1639_v49, %v1332_v47  ;;  %v1662_v54 = vpop.f32.mrf.mxu1 }
 0x20d   :  { %v1641_v55 = vpop.f32.mrf.mxu0 }
 0x20e   :  { %v1414_v57 = vadd.f32 %v1661_v53, %v1373_v38  ;;  %v1642_v58 = vadd.f32 %v1641_v55, %v1640_v51  ;;  %v1663_v59 = vpop.f32.mrf.mxu1 }
 0x20f   :  { %v1664_v62 = vadd.f32 %v1663_v59, %v1662_v54 }
 0x210   :  { %vm1420_vm0 = vcmp.ge.f32.partialorder %v1414_v57, 0.0  ;;  %v1422_v60 = vmul.f32 0.01, %v1414_v57  ;;  %v1376_v61 = vadd.f32 %v1642_v58, %v1335_v56 }
 0x212   :  { %v1424_v63 = vsel %vm1420_vm0, %v1414_v57, %v1422_v60  ;;  %v1417_v40 = vadd.f32 %v1664_v62, %v1376_v61 }
 0x213   :  { %1426 = vst [vmem:[#allocation10] sm:$0xff] %v1424_v63 }
 0x214   :  { %vm1421_vm1 = vcmp.ge.f32.partialorder %v1417_v40, 0.0  ;;  %v1423_v1 = vmul.f32 0.01, %v1417_v40 }
 0x216   :  { %v1425_v2 = vsel %vm1421_vm1, %v1417_v40, %v1423_v1 }
 0x217   :  { %1427 = vst [vmem:[#allocation10 + $0x8] sm:$0xff] %v1425_v2 }
 0x218   :  { %1833 = shalt.err (!%p1830_p10)
}
 0x219   :  { %s1860_s17 = smov 128   ;;  %s1861_s18 = smov 8  }
 0x21a   :  { %1439 = dma.vmem_to_hbm [thread:$0]  %s1434_s15, 256, %s1952_s5, [#allocation4], %s1860_s17, %s1860_s17, %s1861_s18  }
 0x21b   :  { %1848 = dma.done.wait [#allocation4], 256  }
 0x21c   :  { %1849 = vsyncadd [#allocation4], 4294967040 }
 0x21d   :  { %1443 = vsyncpa [#allocation3], 1 }
 0x21e   :  { %1444 = vsyncpa [#allocation6], 1 }
 0x21f   :  { %1445 = vsyncpa [#allocation9], 1 }
 0x220   :  { %1446 = vsyncpa [#allocation4], 1 }

</bundles_post_ra>
